<compile_context>
chip_gen: v5e
topology: v5e:2x2
jax: 0.10.0
libtpu: 0.0.40
codegen_flags: <defaults>
</compile_context>

<pallas_src>
import functools

import jax
import jax.numpy as jnp
from jax.experimental import pallas as pl
from jax.experimental.pallas import tpu as pltpu


def _outconv_kernel(w_ref, x_ref, o_ref):
    # w_ref: (Cout, Cin)    full f32 weight matrix (tiny, VMEM-resident).
    # x_ref: (nb, Cin, tm)  packed pixel tiles, pixels on the lane axis.
    # o_ref: (nb, Cout, tm) output tiles, pixels on the lane axis.
    nb, cin, _ = x_ref.shape
    w = w_ref[...]                                     # (Cout, Cin), f32

    for b in range(nb):                                # static unroll (nb small)
        x_b = x_ref[b]                                 # (Cin, tm), native dtype
        if cin > 16:
            # Escape hatch for fat 1x1 convs: contract on the MXU (separate
            # VLIW slot) instead of Cin unrolled VALU MACs.
            acc = jnp.dot(w, x_b, preferred_element_type=jnp.float32)
        else:
            # Unrolled VPU multiply-accumulate over the small channel axis.
            # Per-term promotion (w is f32) avoids materializing a full f32
            # copy of the x tile -> lower vreg/VMEM pressure at large tm.
            acc = w[:, 0:1] * x_b[0:1, :]
            for ci in range(1, cin):
                acc = acc + w[:, ci:ci + 1] * x_b[ci:ci + 1, :]
        o_ref[b] = acc.astype(o_ref.dtype)


def _choose_tiles(n, hw):
    """Pick (nb images per step, tm pixels per step) from static shapes."""
    LANE = 128
    TM_MAX = 64 * 1024        # 128*TM_MAX B ~ 8 MiB double-buffered at Cin=4/Cout=8 f32
    TARGET_PIXELS = 32 * 1024  # per-step pixel target: amortizes ~0.35 us/step overhead
    NB_MAX = 32                # bound on the static per-step batch unroll

    def rup(v, m):
        return -(-v // m) * m

    def cdiv(a, b):
        return -(-a // b)

    # Lane-dense (128-aligned) pixel tile, capped by the VMEM budget.
    tm = min(rup(hw, LANE), TM_MAX)
    if tm >= hw:
        # Whole image fits one pixel tile -> pack several images per grid step.
        nb = max(1, min(n, NB_MAX, TARGET_PIXELS // tm))
    else:
        nb = 1

    # Keep >= 2 grid steps whenever possible so both v7x TensorCores get work.
    if cdiv(n, nb) * cdiv(hw, tm) < 2:
        if n > 1:
            nb = (n + 1) // 2
        elif hw > LANE:
            tm = rup(cdiv(hw, 2), LANE)
    return nb, tm


@jax.jit
def outconv_forward(x_nchw, weight):
    """1x1 conv, stride 1, padding 0, groups 1, bias=False (PyTorch `outconv`).

    x_nchw : (N, Cin, H, W)
    weight : (Cout, Cin, 1, 1)   -- PyTorch Conv2d weight layout
    returns: (N, Cout, H, W)
    """
    n, cin, h, w = x_nchw.shape
    cout = weight.shape[0]
    hw = h * w

    # Free, contiguous reshapes — no transposes.
    x3 = x_nchw.reshape(n, cin, hw)                        # (N, Cin, HW)
    w_mat = weight.reshape(cout, cin).astype(jnp.float32)  # (Cout, Cin)

    nb, tm = _choose_tiles(n, hw)
    grid = (pl.cdiv(n, nb), pl.cdiv(hw, tm))

    out3 = pl.pallas_call(
        _outconv_kernel,
        out_shape=jax.ShapeDtypeStruct((n, cout, hw), x_nchw.dtype),
        grid_spec=pltpu.PrefetchScalarGridSpec(
            num_scalar_prefetch=0,
            grid=grid,
            in_specs=[
                pl.BlockSpec((cout, cin), lambda b, m: (0, 0)),        # weights
                pl.BlockSpec((nb, cin, tm), lambda b, m: (b, 0, m)),   # x tiles
            ],
            out_specs=pl.BlockSpec((nb, cout, tm), lambda b, m: (b, 0, m)),
        ),
        compiler_params=pltpu.CompilerParams(
            dimension_semantics=("parallel", "parallel"),
        ),
    )(w_mat, x3)

    return out3.reshape(n, cout, h, w)


if __name__ == "__main__":
    # Module config: outconv(inc=4, outc=8); input NCHW (2, 4, 16, 16)
    inc, outc = 4, 8
    n, hh, ww = 2, 16, 16

    key = jax.random.PRNGKey(0)
    kx, kw = jax.random.split(key)
    x = jax.random.normal(kx, (n, inc, hh, ww), dtype=jnp.float32)
    # Deterministic weight (shape matches nn.Conv2d(inc, outc, 1, bias=False))
    weight = jax.random.normal(kw, (outc, inc, 1, 1), dtype=jnp.float32) * 0.1

    y = outconv_forward(x, weight)
    y = jax.block_until_ready(y)

    # Reference check (pure JAX einsum of the same 1x1 conv)
    y_ref = jnp.einsum("nchw,oc->nohw", x, weight.reshape(outc, inc))
    assert y.shape == (n, outc, hh, ww)
    assert jnp.allclose(y, y_ref, atol=1e-5, rtol=1e-5)

    print("KERNEL_OK")
</pallas_src>

<mosaic_0001>
module attributes {stable_mosaic.version = 11 : i64} {
  func.func @_outconv_kernel(%arg0: i32, %arg1: i32, %arg2: memref<8x4xf32, #tpu.memory_space<vmem>>, %arg3: memref<1x4x256xf32, #tpu.memory_space<vmem>>, %arg4: memref<1x8x256xf32, #tpu.memory_space<vmem>>) attributes {dimension_semantics = [#tpu.dimension_semantics<parallel>, #tpu.dimension_semantics<parallel>], iteration_bounds = array<i64: 2, 1>, scalar_prefetch = 0 : i64, scratch_operands = 0 : i64, tpu.core_type = #tpu.core_type<tc>, window_params = [{pipeline_mode = #tpu.pipeline_mode<synchronous>, transform_indices = @transform_0, window_bounds = array<i64: 8, 4>}, {transform_indices = @transform_1, window_bounds = array<i64: 1, 4, 256>}, {transform_indices = @transform_2, window_bounds = array<i64: 1, 8, 256>}]} {
    %c0 = arith.constant 0 : index
    %c0_0 = arith.constant 0 : index
    %0 = vector.load %arg2[%c0, %c0_0] : memref<8x4xf32, #tpu.memory_space<vmem>>, vector<8x4xf32>
    %c0_1 = arith.constant 0 : index
    %c0_2 = arith.constant 0 : index
    %c0_3 = arith.constant 0 : index
    %1 = vector.load %arg3[%c0_1, %c0_2, %c0_3] : memref<1x4x256xf32, #tpu.memory_space<vmem>>, vector<1x4x256xf32>
    %2 = vector.shape_cast %1 : vector<1x4x256xf32> to vector<4x256xf32>
    %3 = vector.extract_strided_slice %0 {offsets = [0, 0], sizes = [8, 1], strides = [1, 1]} : vector<8x4xf32> to vector<8x1xf32>
    %4 = vector.extract_strided_slice %2 {offsets = [0, 0], sizes = [1, 256], strides = [1, 1]} : vector<4x256xf32> to vector<1x256xf32>
    %5 = vector.broadcast %3 : vector<8x1xf32> to vector<8x256xf32>
    %6 = vector.broadcast %4 : vector<1x256xf32> to vector<8x256xf32>
    %7 = arith.mulf %5, %6 : vector<8x256xf32>
    %8 = vector.extract_strided_slice %0 {offsets = [0, 1], sizes = [8, 1], strides = [1, 1]} : vector<8x4xf32> to vector<8x1xf32>
    %9 = vector.extract_strided_slice %2 {offsets = [1, 0], sizes = [1, 256], strides = [1, 1]} : vector<4x256xf32> to vector<1x256xf32>
    %10 = vector.broadcast %8 : vector<8x1xf32> to vector<8x256xf32>
    %11 = vector.broadcast %9 : vector<1x256xf32> to vector<8x256xf32>
    %12 = arith.mulf %10, %11 : vector<8x256xf32>
    %13 = arith.addf %7, %12 : vector<8x256xf32>
    %14 = vector.extract_strided_slice %0 {offsets = [0, 2], sizes = [8, 1], strides = [1, 1]} : vector<8x4xf32> to vector<8x1xf32>
    %15 = vector.extract_strided_slice %2 {offsets = [2, 0], sizes = [1, 256], strides = [1, 1]} : vector<4x256xf32> to vector<1x256xf32>
    %16 = vector.broadcast %14 : vector<8x1xf32> to vector<8x256xf32>
    %17 = vector.broadcast %15 : vector<1x256xf32> to vector<8x256xf32>
    %18 = arith.mulf %16, %17 : vector<8x256xf32>
    %19 = arith.addf %13, %18 : vector<8x256xf32>
    %20 = vector.extract_strided_slice %0 {offsets = [0, 3], sizes = [8, 1], strides = [1, 1]} : vector<8x4xf32> to vector<8x1xf32>
    %21 = vector.extract_strided_slice %2 {offsets = [3, 0], sizes = [1, 256], strides = [1, 1]} : vector<4x256xf32> to vector<1x256xf32>
    %22 = vector.broadcast %20 : vector<8x1xf32> to vector<8x256xf32>
    %23 = vector.broadcast %21 : vector<1x256xf32> to vector<8x256xf32>
    %24 = arith.mulf %22, %23 : vector<8x256xf32>
    %25 = arith.addf %19, %24 : vector<8x256xf32>
    %c0_4 = arith.constant 0 : index
    %c0_5 = arith.constant 0 : index
    %c0_6 = arith.constant 0 : index
    %26 = vector.load %arg4[%c0_4, %c0_5, %c0_6] : memref<1x8x256xf32, #tpu.memory_space<vmem>>, vector<1x8x256xf32>
    %27 = vector.shape_cast %26 : vector<1x8x256xf32> to vector<8x256xf32>
    %28 = vector.shape_cast %25 : vector<8x256xf32> to vector<1x8x256xf32>
    tpu.vector_store %arg4[%c0_4, %c0_5, %c0_6], %28 {strides = array<i32>} : memref<1x8x256xf32, #tpu.memory_space<vmem>>, vector<1x8x256xf32>,
    return
  }
  func.func @transform_0(%arg0: i32, %arg1: i32) -> (i32, i32) {
    %c0_i32 = arith.constant 0 : i32
    %c0_i32_0 = arith.constant 0 : i32
    %c0_i32_1 = arith.constant 0 : i32
    return %c0_i32, %c0_i32_0 : i32, i32
  }
  func.func @transform_1(%arg0: i32, %arg1: i32) -> (i32, i32, i32) {
    %c0_i32 = arith.constant 0 : i32
    %c0_i32_0 = arith.constant 0 : i32
    return %arg0, %c0_i32, %arg1 : i32, i32, i32
  }
  func.func @transform_2(%arg0: i32, %arg1: i32) -> (i32, i32, i32) {
    %c0_i32 = arith.constant 0 : i32
    %c0_i32_0 = arith.constant 0 : i32
    return %arg0, %c0_i32, %arg1 : i32, i32, i32
  }
}

</mosaic_0001>

<bundles_post_ra>
// kernel: outconv_forward.1
= control target key start
LH: loop header
LB: loop body
LE: loop exit
PB: predicated region body
PF: predicated region fallthrough
CT: control target
= control target key end

     0   :  { %s419_s9 = smov 0   ;;  %s421_s10 = smov 0   ;;  %s459_s0 = inlined_call_operand.vmem [shape: f32[8,4], index: 0, kind: input, shape index: {}]   ;;  %s460_s1 = inlined_call_operand.vmem [shape: f32[2,4,256], index: 1, kind: input, shape index: {}]   ;;  %s461_s2 = inlined_call_operand.vmem [shape: f32[2,8,256], index: 2, kind: output, shape index: {}]  }
   0x1   :  { %s423_s11 = smov 0  }
   0x2 LB: > { %s24_s12 = sadd.s32 1, %s394_s10  ;;  %p334_p0 = scmp.ge.s32.totalorder %s398_s11, 1  ;;  %s398_s11 = sphi %s423_s11, %s12_s11   ;;  %s394_s10 = sphi %s421_s10, %s463_s10   ;;  %s390_s9 = sphi %s419_s9, %s462_s9  }
   0x3   : > { %p26_p1 = scmp.ge.s32.totalorder %s24_s12, 2  ;;  %p133_p2 = scmp.lt.s32.totalorder %s398_s11, 3 }
   0x5   : > { %s465_s12 = smov (%p26_p1, %s24_s12), 0  ;;  %p134_p3 = pnand %p334_p0, %p133_p2 }
   0x6   : > { %p164_p4 = scmp.lt.s32.totalorder (!%p134_p3), %s390_s9, 1 }
   0x7   : > { %137 = sbr.rel (%p134_p3) target bundleno = 148 (0x94), region = 28 }
   0xc   : > { %v183_v0 = vld [vmem:[%s459_s0] sm:$0xff]  ;;  %v400_v1 = vmov 0   ;;  %v401_v2 = vmov 2   ;;  %v402_v3 = vmov 1   ;;  %v403_v4 = vmov 3   ;;  %s467_s9 = smov (!%p164_p4, %s390_s9), 1 }
   0xd   : > { %371 = vset.pattern.permute.xlu0 %v400_v1  ;;  %373 = vset.pattern.permute.xlu1 %v401_v2  ;;  %s341_s15 = sshll.u32 %s467_s9, 3  ;;  %s342_s19 = sshll.u32 %s467_s9, 4 }
   0xe   : > { %187 = vperm.xlu0 %371, %v183_v0   ;;  %214 = vperm.xlu1 %373, %v183_v0   ;;  %s171_s18 = scalar_lea.vmem %s460_s1, %s341_s15  ;;  %s181_s22 = scalar_lea.vmem %s461_s2, %s342_s19 }
   0xf   : > { %v184_v5 = vld [vmem:[%s171_s18] sm:$0xff] }
  0x10   : > { %v191_v8 = vperm.slane %v184_v5, 0  ;;  %v192_v9 = vperm.slane %v184_v5, 4  ;;  %v203_v10 = vperm.slane %v184_v5, 1  ;;  %v204_v11 = vperm.slane %v184_v5, 5 }
  0x11   : > { %v217_v12 = vperm.slane %v184_v5, 2  ;;  %v218_v13 = vperm.slane %v184_v5, 6  ;;  %v231_v14 = vperm.slane %v184_v5, 3  ;;  %v232_v15 = vperm.slane %v184_v5, 7 }
  0x12   : > { %v195_v16 = vperm.slane %v191_v8, 0  ;;  %v196_v17 = vperm.slane %v192_v9, 0  ;;  %v207_v18 = vperm.slane %v203_v10, 1  ;;  %v208_v19 = vperm.slane %v204_v11, 1 }
  0x13   : > { %v221_v20 = vperm.slane %v217_v12, 2  ;;  %v222_v21 = vperm.slane %v218_v13, 2  ;;  %v235_v22 = vperm.slane %v231_v14, 3  ;;  %v236_v23 = vperm.slane %v232_v15, 3 }
  0x16   : > { %372 = vset.pattern.permute.xlu0 %v402_v3  ;;  %374 = vset.pattern.permute.xlu1 %v403_v4 }
  0x17   : > { %200 = vperm.xlu0 %372, %v183_v0   ;;  %228 = vperm.xlu1 %374, %v183_v0  }
  0x1f   : > { %375 = vset.pattern.permute.xlu0 %v403_v4 }
  0x80   : > { %v188_v6 = vpop.permute.xlu0 %187  ;;  %v215_v7 = vpop.permute.xlu1 %214 }
  0x81   : > { %v197_v26 = vmul.f32 %v195_v16, %v188_v6  ;;  %v198_v27 = vmul.f32 %v196_v17, %v188_v6  ;;  %v223_v30 = vmul.f32 %v221_v20, %v215_v7  ;;  %v224_v31 = vmul.f32 %v222_v21, %v215_v7 }
  0x89   : > { %v201_v24 = vpop.permute.xlu0 %200  ;;  %v229_v25 = vpop.permute.xlu1 %228 }
  0x8a   : > { %v209_v28 = vmul.f32 %v207_v18, %v201_v24  ;;  %v210_v29 = vmul.f32 %v208_v19, %v201_v24  ;;  %v237_v34 = vmul.f32 %v235_v22, %v229_v25  ;;  %v238_v35 = vmul.f32 %v236_v23, %v229_v25 }
  0x8c   : > { %v211_v32 = vadd.f32 %v209_v28, %v197_v26  ;;  %v212_v33 = vadd.f32 %v210_v29, %v198_v27 }
  0x8e   : > { %v225_v36 = vadd.f32 %v223_v30, %v211_v32  ;;  %v226_v37 = vadd.f32 %v224_v31, %v212_v33 }
  0x90   : > { %v239_v38 = vadd.f32 %v237_v34, %v225_v36  ;;  %v240_v39 = vadd.f32 %v238_v35, %v226_v37 }
  0x92   : > { %241 = vst [vmem:[%s181_s22] sm:$0xff] %v239_v38 }
  0x93   : > { %242 = vst [vmem:[%s181_s22 + $0x8] sm:$0xff] %v240_v39 }
  0x94 PF: > { %s12_s11 = sadd.s32 1, %s398_s11   ;;  %s462_s9 = smov %s394_s10 }
  0x95   : > { %p9_p5 = scmp.ge.s32.totalorder %s12_s11, 4   ;;  %s463_s10 = smov %s465_s12 }
  0x97   :  { %11 = sbr.rel (!%p9_p5) target bundleno = 2 (0x2), region = 58 }

</bundles_post_ra>
